<compile_context>
chip_gen: v5e
topology: v5e:2x2
jax: 0.10.0
libtpu: 0.0.40
codegen_flags: <defaults>
</compile_context>

<pallas_src>
import functools

import numpy as np
import jax
import jax.numpy as jnp
from jax import lax
from jax.experimental import pallas as pl
from jax.experimental.pallas import tpu as pltpu


# ----------------------------------------------------------------------------
# Parameter construction (plain JAX / numpy glue, deterministic)
# ----------------------------------------------------------------------------
def state_space_matrices(memory_size: int, theta: float):
    """Discretized (zoh, dt=1) LTI matrices A, B of the LMU (float32)."""
    Q = np.arange(memory_size, dtype=np.float64).reshape(-1, 1)
    R = (2.0 * Q + 1.0) / theta
    i, j = np.meshgrid(Q, Q, indexing="ij")
    A = R * np.where(i < j, -1.0, (-1.0) ** (i - j + 1))      # [M, M]
    B = R * (-1.0) ** Q                                       # [M, 1]
    # zoh discretization via augmented matrix exponential:
    #   expm([[A, B], [0, 0]] * dt) = [[Ad, Bd], [0, I]]
    M = memory_size
    aug = np.zeros((M + 1, M + 1), dtype=np.float64)
    aug[:M, :M] = A
    aug[:M, M:] = B
    exp_aug = np.asarray(jax.scipy.linalg.expm(jnp.asarray(aug, dtype=jnp.float32)))
    Ad = exp_aug[:M, :M].astype(np.float32)                   # [M, M]
    Bd = exp_aug[:M, M:].astype(np.float32)                   # [M, 1]
    return Ad, Bd


def lecun_uniform(key, shape):
    fan_in = shape[-1]
    limit = np.sqrt(3.0 / fan_in)
    return jax.random.uniform(key, shape, dtype=jnp.float32, minval=-limit, maxval=limit)


def xavier_normal(key, shape):
    fan_out, fan_in = shape
    std = np.sqrt(2.0 / (fan_in + fan_out))
    return std * jax.random.normal(key, shape, dtype=jnp.float32)


def init_lmu_params(key, input_size, hidden_size, memory_size, theta):
    """psmnist=False init path of LMUCell.initParameters (deterministic)."""
    k = jax.random.split(key, 6)
    A, B = state_space_matrices(memory_size, theta)
    return dict(
        e_x=lecun_uniform(k[0], (1, input_size)),
        e_h=lecun_uniform(k[1], (1, hidden_size)),
        e_m=jnp.zeros((1, memory_size), dtype=jnp.float32),
        W_x=xavier_normal(k[2], (hidden_size, input_size)),
        W_h=xavier_normal(k[3], (hidden_size, hidden_size)),
        W_m=xavier_normal(k[4], (hidden_size, memory_size)),
        A=jnp.asarray(A),
        B=jnp.asarray(B),
    )


def pack_params(params):
    """One-time algebraic fusion of the LMUCell parameters.

    With the state slab s = [h | m | x] (width K = H + M + I):
        u      = s @ ecat^T
        m_new  = s @ G            where G     = [0; A^T; 0] + ecat^T @ B^T
        h_new  = tanh(s @ W_eff)  where W_eff = [W_h^T; 0; W_x^T] + G @ W_m^T
    so one matmul  s @ [W_eff | G]  produces [pre_h | m_new].
    """
    e_h, e_m, e_x = params["e_h"], params["e_m"], params["e_x"]
    W_h, W_m, W_x = params["W_h"], params["W_m"], params["W_x"]
    A, B = params["A"], params["B"]
    H = W_h.shape[0]
    M = A.shape[0]
    I = W_x.shape[1]

    ecat = jnp.concatenate([e_h, e_m, e_x], axis=1)                    # [1, K]
    brow = B.T                                                         # [1, M]
    a_slab = jnp.concatenate(
        [jnp.zeros((H, M), jnp.float32), A.T, jnp.zeros((I, M), jnp.float32)],
        axis=0)                                                        # [K, M]
    G = a_slab + ecat.T @ brow                                         # [K, M]
    w_base = jnp.concatenate(
        [W_h.T, jnp.zeros((M, H), jnp.float32), W_x.T], axis=0)        # [K, H]
    W_eff = w_base + G @ W_m.T                                         # [K, H]
    W_full = jnp.concatenate([W_eff, G], axis=1)                       # [K, H+M]
    return {"w_full": W_full.astype(jnp.float32)}


# ----------------------------------------------------------------------------
# Pallas kernel: a chunk of TT recurrent steps per grid invocation
# ----------------------------------------------------------------------------
def lmu_seq_kernel(x_ref, hm0_ref, w_ref, hm_out_ref, hm_state,
                   *, hidden_size, steps, unroll):
    H = hidden_size
    c = pl.program_id(1)                       # chunk index along the T axis

    # Load the initial packed state [h0 | m0] into the persistent scratch on
    # the first chunk (also re-initializes when the batch-shard axis advances,
    # since the chunk axis is innermost and restarts at 0).
    @pl.when(c == 0)
    def _():
        hm_state[...] = hm0_ref[...]

    hm = hm_state[...]                         # [B, H+M], carried in vregs below
    w = w_ref[...]                             # resident fused weights [K, H+M]

    n_lanes = hm.shape[-1]
    # Lane mask selecting the h segment: tanh(h), identity on m.  Hoisted out
    # of the loop (JAX does not CSE broadcasts).
    h_mask = lax.broadcasted_iota(jnp.int32, (1, n_lanes), 1) < H

    def step(t, hm):
        slab = jnp.concatenate([hm, x_ref[t]], axis=-1)          # [B, K] = [h|m|x]
        out = jnp.dot(slab, w, preferred_element_type=jnp.float32)  # [B, H+M]
        return jnp.where(h_mask, jnp.tanh(out), out)             # [h_new | m_new]

    hm = lax.fori_loop(0, steps, step, hm, unroll=unroll)

    hm_state[...] = hm          # carry state to the next chunk (VMEM scratch)
    hm_out_ref[...] = hm        # packed [h | m] output, lane-dense, every chunk


def lmu_sequence_forward(packed, x_seq, h0, m0, *, max_chunk=256, batch_shards=1):
    """Run the LMU cell over a whole sequence in one fused kernel.

    x_seq: [T, B, I], h0: [B, H], m0: [B, M]  ->  (h_T, m_T)
    """
    T, Bb, I = x_seq.shape
    H = h0.shape[1]
    M = m0.shape[1]
    K = H + M + I

    assert Bb % batch_shards == 0, "batch must divide evenly across shards"
    Bs = Bb // batch_shards
    # TPU tiling rule: second-to-last block dim must be a multiple of 8 (or full).
    assert batch_shards == 1 or Bs % 8 == 0, "per-shard batch must be a multiple of 8"

    # Chunk length along T: whole sequence if small, else the largest divisor
    # of T that fits the chunk budget (keeps blocks exact, default buffering
    # of 2 on the x BlockSpec hides the per-chunk DMA).
    if T <= max_chunk:
        TT = T
    else:
        TT = max(d for d in range(1, max_chunk + 1) if T % d == 0)
    num_chunks = T // TT

    hm0 = jnp.concatenate([h0, m0], axis=-1)                   # [B, H+M]

    kernel = functools.partial(
        lmu_seq_kernel, hidden_size=H, steps=TT, unroll=bool(TT <= 64))

    grid_spec = pltpu.PrefetchScalarGridSpec(
        num_scalar_prefetch=0,
        grid=(batch_shards, num_chunks),
        in_specs=[
            pl.BlockSpec((TT, Bs, I), lambda b, c: (c, b, 0)),   # x chunk: streamed
            pl.BlockSpec((Bs, H + M), lambda b, c: (b, 0)),      # hm0: resident
            pl.BlockSpec((K, H + M), lambda b, c: (0, 0)),       # fused weights: resident
        ],
        out_specs=pl.BlockSpec((Bs, H + M), lambda b, c: (b, 0)),  # packed [h_T | m_T]
        scratch_shapes=[pltpu.VMEM((Bs, H + M), jnp.float32)],   # inter-chunk state
    )

    hm = pl.pallas_call(
        kernel,
        out_shape=jax.ShapeDtypeStruct((Bb, H + M), jnp.float32),
        grid_spec=grid_spec,
        compiler_params=pltpu.CompilerParams(
            # batch shards are independent (v7x megacore); the recurrence over
            # chunks is strictly sequential.
            dimension_semantics=("parallel", "arbitrary")),
    )(x_seq, hm0, packed["w_full"])

    return hm[:, :H], hm[:, H:]


def lmu_cell_forward(packed, x, h, m):
    """Single LMUCell step (original module semantics): x:[B,I], (h,m) -> (h',m')."""
    return lmu_sequence_forward(packed, x[None], h, m)


# ----------------------------------------------------------------------------
# Pure-JAX reference (mirrors the PyTorch forward exactly)
# ----------------------------------------------------------------------------
def lmu_cell_reference(params, x, h, m):
    u = (x @ params["e_x"].T) + (h @ params["e_h"].T) + (m @ params["e_m"].T)
    m_new = (m @ params["A"].T) + (u @ params["B"].T)
    h_new = jnp.tanh((x @ params["W_x"].T) + (h @ params["W_h"].T)
                     + (m_new @ params["W_m"].T))
    return h_new, m_new


def lmu_sequence_reference(params, x_seq, h0, m0):
    h, m = h0, m0
    for t in range(x_seq.shape[0]):
        h, m = lmu_cell_reference(params, x_seq[t], h, m)
    return h, m


if __name__ == "__main__":
    # Small shapes consistent with the module's forward; H + M = 128 keeps the
    # packed state/output exactly one lane width (lane-dense, unmasked stores).
    batch = 8
    input_size = 32
    hidden_size = 64
    memory_size = 64
    theta = 64
    seq_len = 16

    key = jax.random.PRNGKey(0)
    kp, kx, kh, km = jax.random.split(key, 4)

    params = init_lmu_params(kp, input_size, hidden_size, memory_size, theta)
    packed = pack_params(params)   # one-time algebraic fusion, not per call

    x_seq = jax.random.normal(kx, (seq_len, batch, input_size), dtype=jnp.float32)
    h0 = jax.random.normal(kh, (batch, hidden_size), dtype=jnp.float32)
    m0 = jax.random.normal(km, (batch, memory_size), dtype=jnp.float32)

    # 1) Fused sequence: single grid step, x fully resident, in-kernel loop.
    h_T, m_T = lmu_sequence_forward(packed, x_seq, h0, m0)
    jax.block_until_ready((h_T, m_T))
    assert h_T.shape == (batch, hidden_size) and m_T.shape == (batch, memory_size)

    h_ref, m_ref = lmu_sequence_reference(params, x_seq, h0, m0)
    np.testing.assert_allclose(np.asarray(h_T), np.asarray(h_ref), rtol=2e-3, atol=2e-3)
    np.testing.assert_allclose(np.asarray(m_T), np.asarray(m_ref), rtol=2e-3, atol=2e-3)

    # 2) Multi-chunk path: T blocked into 16-step chunks, state carried across
    #    grid steps in VMEM scratch.
    seq_long = 48
    x_long = jax.random.normal(jax.random.PRNGKey(7),
                               (seq_long, batch, input_size), dtype=jnp.float32)
    h_L, m_L = lmu_sequence_forward(packed, x_long, h0, m0, max_chunk=16)
    jax.block_until_ready((h_L, m_L))
    h_Lr, m_Lr = lmu_sequence_reference(params, x_long, h0, m0)
    np.testing.assert_allclose(np.asarray(h_L), np.asarray(h_Lr), rtol=2e-3, atol=2e-3)
    np.testing.assert_allclose(np.asarray(m_L), np.asarray(m_Lr), rtol=2e-3, atol=2e-3)

    # 3) Single-step call (matches the original module's forward signature).
    h1, m1 = lmu_cell_forward(packed, x_seq[0], h0, m0)
    jax.block_until_ready((h1, m1))
    h1_ref, m1_ref = lmu_cell_reference(params, x_seq[0], h0, m0)
    np.testing.assert_allclose(np.asarray(h1), np.asarray(h1_ref), rtol=2e-3, atol=2e-3)
    np.testing.assert_allclose(np.asarray(m1), np.asarray(m1_ref), rtol=2e-3, atol=2e-3)

    print("KERNEL_OK")
</pallas_src>

<mosaic_0001>
module attributes {stable_mosaic.version = 11 : i64} {
  func.func @lmu_seq_kernel(%arg0: i32, %arg1: i32, %arg2: memref<16x8x32xf32, #tpu.memory_space<vmem>>, %arg3: memref<8x128xf32, #tpu.memory_space<vmem>>, %arg4: memref<160x128xf32, #tpu.memory_space<vmem>>, %arg5: memref<8x128xf32, #tpu.memory_space<vmem>>, %arg6: memref<8x128xf32, #tpu.memory_space<vmem>>) attributes {dimension_semantics = [#tpu.dimension_semantics<parallel>, #tpu.dimension_semantics<arbitrary>], iteration_bounds = array<i64: 1, 1>, scalar_prefetch = 0 : i64, scratch_operands = 1 : i64, tpu.core_type = #tpu.core_type<tc>, window_params = [{transform_indices = @transform_0, window_bounds = array<i64: 16, 8, 32>}, {transform_indices = @transform_1, window_bounds = array<i64: 8, 128>}, {pipeline_mode = #tpu.pipeline_mode<synchronous>, transform_indices = @transform_2, window_bounds = array<i64: 160, 128>}, {transform_indices = @transform_3, window_bounds = array<i64: 8, 128>}]} {
    %c0_i32 = arith.constant 0 : i32
    %0 = arith.cmpi eq, %arg1, %c0_i32 : i32
    %1 = arith.extui %0 : i1 to i32
    %c0_i32_0 = arith.constant 0 : i32
    %2 = arith.cmpi ne, %1, %c0_i32_0 : i32
    scf.if %2 {
      %c0_56 = arith.constant 0 : index
      %c0_57 = arith.constant 0 : index
      %154 = vector.load %arg3[%c0_56, %c0_57] : memref<8x128xf32, #tpu.memory_space<vmem>>, vector<8x128xf32>
      %c0_58 = arith.constant 0 : index
      %c0_59 = arith.constant 0 : index
      %155 = vector.load %arg6[%c0_58, %c0_59] : memref<8x128xf32, #tpu.memory_space<vmem>>, vector<8x128xf32>
      tpu.vector_store %arg6[%c0_58, %c0_59], %154 {strides = array<i32>} : memref<8x128xf32, #tpu.memory_space<vmem>>, vector<8x128xf32>,
    } else {
    }
    %c0 = arith.constant 0 : index
    %c0_1 = arith.constant 0 : index
    %3 = vector.load %arg6[%c0, %c0_1] : memref<8x128xf32, #tpu.memory_space<vmem>>, vector<8x128xf32>
    %c0_2 = arith.constant 0 : index
    %c0_3 = arith.constant 0 : index
    %4 = vector.load %arg4[%c0_2, %c0_3] : memref<160x128xf32, #tpu.memory_space<vmem>>, vector<160x128xf32>
    %5 = tpu.iota {dimensions = array<i32: 1>} : vector<1x128xi32>
    %c64_i32 = arith.constant 64 : i32
    %6 = vector.broadcast %c64_i32 : i32 to vector<1x128xi32>
    %7 = arith.cmpi slt, %5, %6 : vector<1x128xi32>
    %c0_i32_4 = arith.constant 0 : i32
    %8 = arith.index_cast %c0_i32_4 : i32 to index
    %c0_5 = arith.constant 0 : index
    %c0_6 = arith.constant 0 : index
    %9 = vector.load %arg2[%8, %c0_5, %c0_6] : memref<16x8x32xf32, #tpu.memory_space<vmem>>, vector<1x8x32xf32>
    %10 = vector.shape_cast %9 : vector<1x8x32xf32> to vector<8x32xf32>
    %11 = tpu.concatenate %3, %10 in 1 : vector<8x128xf32>, vector<8x32xf32> -> vector<8x160xf32>
    %cst = arith.constant dense<0.000000e+00> : vector<8x128xf32>
    %12 = tpu.matmul %11, %4, %cst {dimension_numbers = #tpu.dot_dimension_numbers<[1], [0], [0], [1], [0, 0, 1, 1], [], []>} : vector<8x160xf32>, vector<160x128xf32>, vector<8x128xf32> -> vector<8x128xf32>
    %13 = math.tanh %12 : vector<8x128xf32>
    %14 = vector.shape_cast %7 : vector<1x128xi1> to vector<1x128xi1>
    %15 = vector.broadcast %14 : vector<1x128xi1> to vector<8x128xi1>
    %16 = arith.select %15, %13, %12 : vector<8x128xi1>, vector<8x128xf32>
    %c1_i32 = arith.constant 1 : i32
    %17 = arith.index_cast %c1_i32 : i32 to index
    %c0_7 = arith.constant 0 : index
    %c0_8 = arith.constant 0 : index
    %18 = vector.load %arg2[%17, %c0_7, %c0_8] : memref<16x8x32xf32, #tpu.memory_space<vmem>>, vector<1x8x32xf32>
    %19 = vector.shape_cast %18 : vector<1x8x32xf32> to vector<8x32xf32>
    %20 = tpu.concatenate %16, %19 in 1 : vector<8x128xf32>, vector<8x32xf32> -> vector<8x160xf32>
    %cst_9 = arith.constant dense<0.000000e+00> : vector<8x128xf32>
    %21 = tpu.matmul %20, %4, %cst_9 {dimension_numbers = #tpu.dot_dimension_numbers<[1], [0], [0], [1], [0, 0, 1, 1], [], []>} : vector<8x160xf32>, vector<160x128xf32>, vector<8x128xf32> -> vector<8x128xf32>
    %22 = math.tanh %21 : vector<8x128xf32>
    %23 = vector.shape_cast %7 : vector<1x128xi1> to vector<1x128xi1>
    %24 = vector.broadcast %23 : vector<1x128xi1> to vector<8x128xi1>
    %25 = arith.select %24, %22, %21 : vector<8x128xi1>, vector<8x128xf32>
    %c2_i32 = arith.constant 2 : i32
    %26 = arith.index_cast %c2_i32 : i32 to index
    %c0_10 = arith.constant 0 : index
    %c0_11 = arith.constant 0 : index
    %27 = vector.load %arg2[%26, %c0_10, %c0_11] : memref<16x8x32xf32, #tpu.memory_space<vmem>>, vector<1x8x32xf32>
    %28 = vector.shape_cast %27 : vector<1x8x32xf32> to vector<8x32xf32>
    %29 = tpu.concatenate %25, %28 in 1 : vector<8x128xf32>, vector<8x32xf32> -> vector<8x160xf32>
    %cst_12 = arith.constant dense<0.000000e+00> : vector<8x128xf32>
    %30 = tpu.matmul %29, %4, %cst_12 {dimension_numbers = #tpu.dot_dimension_numbers<[1], [0], [0], [1], [0, 0, 1, 1], [], []>} : vector<8x160xf32>, vector<160x128xf32>, vector<8x128xf32> -> vector<8x128xf32>
    %31 = math.tanh %30 : vector<8x128xf32>
    %32 = vector.shape_cast %7 : vector<1x128xi1> to vector<1x128xi1>
    %33 = vector.broadcast %32 : vector<1x128xi1> to vector<8x128xi1>
    %34 = arith.select %33, %31, %30 : vector<8x128xi1>, vector<8x128xf32>
    %c3_i32 = arith.constant 3 : i32
    %35 = arith.index_cast %c3_i32 : i32 to index
    %c0_13 = arith.constant 0 : index
    %c0_14 = arith.constant 0 : index
    %36 = vector.load %arg2[%35, %c0_13, %c0_14] : memref<16x8x32xf32, #tpu.memory_space<vmem>>, vector<1x8x32xf32>
    %37 = vector.shape_cast %36 : vector<1x8x32xf32> to vector<8x32xf32>
    %38 = tpu.concatenate %34, %37 in 1 : vector<8x128xf32>, vector<8x32xf32> -> vector<8x160xf32>
    %cst_15 = arith.constant dense<0.000000e+00> : vector<8x128xf32>
    %39 = tpu.matmul %38, %4, %cst_15 {dimension_numbers = #tpu.dot_dimension_numbers<[1], [0], [0], [1], [0, 0, 1, 1], [], []>} : vector<8x160xf32>, vector<160x128xf32>, vector<8x128xf32> -> vector<8x128xf32>
    %40 = math.tanh %39 : vector<8x128xf32>
    %41 = vector.shape_cast %7 : vector<1x128xi1> to vector<1x128xi1>
    %42 = vector.broadcast %41 : vector<1x128xi1> to vector<8x128xi1>
    %43 = arith.select %42, %40, %39 : vector<8x128xi1>, vector<8x128xf32>
    %c4_i32 = arith.constant 4 : i32
    %44 = arith.index_cast %c4_i32 : i32 to index
    %c0_16 = arith.constant 0 : index
    %c0_17 = arith.constant 0 : index
    %45 = vector.load %arg2[%44, %c0_16, %c0_17] : memref<16x8x32xf32, #tpu.memory_space<vmem>>, vector<1x8x32xf32>
    %46 = vector.shape_cast %45 : vector<1x8x32xf32> to vector<8x32xf32>
    %47 = tpu.concatenate %43, %46 in 1 : vector<8x128xf32>, vector<8x32xf32> -> vector<8x160xf32>
    %cst_18 = arith.constant dense<0.000000e+00> : vector<8x128xf32>
    %48 = tpu.matmul %47, %4, %cst_18 {dimension_numbers = #tpu.dot_dimension_numbers<[1], [0], [0], [1], [0, 0, 1, 1], [], []>} : vector<8x160xf32>, vector<160x128xf32>, vector<8x128xf32> -> vector<8x128xf32>
    %49 = math.tanh %48 : vector<8x128xf32>
    %50 = vector.shape_cast %7 : vector<1x128xi1> to vector<1x128xi1>
    %51 = vector.broadcast %50 : vector<1x128xi1> to vector<8x128xi1>
    %52 = arith.select %51, %49, %48 : vector<8x128xi1>, vector<8x128xf32>
    %c5_i32 = arith.constant 5 : i32
    %53 = arith.index_cast %c5_i32 : i32 to index
    %c0_19 = arith.constant 0 : index
    %c0_20 = arith.constant 0 : index
    %54 = vector.load %arg2[%53, %c0_19, %c0_20] : memref<16x8x32xf32, #tpu.memory_space<vmem>>, vector<1x8x32xf32>
    %55 = vector.shape_cast %54 : vector<1x8x32xf32> to vector<8x32xf32>
    %56 = tpu.concatenate %52, %55 in 1 : vector<8x128xf32>, vector<8x32xf32> -> vector<8x160xf32>
    %cst_21 = arith.constant dense<0.000000e+00> : vector<8x128xf32>
    %57 = tpu.matmul %56, %4, %cst_21 {dimension_numbers = #tpu.dot_dimension_numbers<[1], [0], [0], [1], [0, 0, 1, 1], [], []>} : vector<8x160xf32>, vector<160x128xf32>, vector<8x128xf32> -> vector<8x128xf32>
    %58 = math.tanh %57 : vector<8x128xf32>
    %59 = vector.shape_cast %7 : vector<1x128xi1> to vector<1x128xi1>
    %60 = vector.broadcast %59 : vector<1x128xi1> to vector<8x128xi1>
    %61 = arith.select %60, %58, %57 : vector<8x128xi1>, vector<8x128xf32>
    %c6_i32 = arith.constant 6 : i32
    %62 = arith.index_cast %c6_i32 : i32 to index
    %c0_22 = arith.constant 0 : index
    %c0_23 = arith.constant 0 : index
    %63 = vector.load %arg2[%62, %c0_22, %c0_23] : memref<16x8x32xf32, #tpu.memory_space<vmem>>, vector<1x8x32xf32>
    %64 = vector.shape_cast %63 : vector<1x8x32xf32> to vector<8x32xf32>
    %65 = tpu.concatenate %61, %64 in 1 : vector<8x128xf32>, vector<8x32xf32> -> vector<8x160xf32>
    %cst_24 = arith.constant dense<0.000000e+00> : vector<8x128xf32>
    %66 = tpu.matmul %65, %4, %cst_24 {dimension_numbers = #tpu.dot_dimension_numbers<[1], [0], [0], [1], [0, 0, 1, 1], [], []>} : vector<8x160xf32>, vector<160x128xf32>, vector<8x128xf32> -> vector<8x128xf32>
    %67 = math.tanh %66 : vector<8x128xf32>
    %68 = vector.shape_cast %7 : vector<1x128xi1> to vector<1x128xi1>
    %69 = vector.broadcast %68 : vector<1x128xi1> to vector<8x128xi1>
    %70 = arith.select %69, %67, %66 : vector<8x128xi1>, vector<8x128xf32>
    %c7_i32 = arith.constant 7 : i32
    %71 = arith.index_cast %c7_i32 : i32 to index
    %c0_25 = arith.constant 0 : index
    %c0_26 = arith.constant 0 : index
    %72 = vector.load %arg2[%71, %c0_25, %c0_26] : memref<16x8x32xf32, #tpu.memory_space<vmem>>, vector<1x8x32xf32>
    %73 = vector.shape_cast %72 : vector<1x8x32xf32> to vector<8x32xf32>
    %74 = tpu.concatenate %70, %73 in 1 : vector<8x128xf32>, vector<8x32xf32> -> vector<8x160xf32>
    %cst_27 = arith.constant dense<0.000000e+00> : vector<8x128xf32>
    %75 = tpu.matmul %74, %4, %cst_27 {dimension_numbers = #tpu.dot_dimension_numbers<[1], [0], [0], [1], [0, 0, 1, 1], [], []>} : vector<8x160xf32>, vector<160x128xf32>, vector<8x128xf32> -> vector<8x128xf32>
    %76 = math.tanh %75 : vector<8x128xf32>
    %77 = vector.shape_cast %7 : vector<1x128xi1> to vector<1x128xi1>
    %78 = vector.broadcast %77 : vector<1x128xi1> to vector<8x128xi1>
    %79 = arith.select %78, %76, %75 : vector<8x128xi1>, vector<8x128xf32>
    %c8_i32 = arith.constant 8 : i32
    %80 = arith.index_cast %c8_i32 : i32 to index
    %c0_28 = arith.constant 0 : index
    %c0_29 = arith.constant 0 : index
    %81 = vector.load %arg2[%80, %c0_28, %c0_29] : memref<16x8x32xf32, #tpu.memory_space<vmem>>, vector<1x8x32xf32>
    %82 = vector.shape_cast %81 : vector<1x8x32xf32> to vector<8x32xf32>
    %83 = tpu.concatenate %79, %82 in 1 : vector<8x128xf32>, vector<8x32xf32> -> vector<8x160xf32>
    %cst_30 = arith.constant dense<0.000000e+00> : vector<8x128xf32>
    %84 = tpu.matmul %83, %4, %cst_30 {dimension_numbers = #tpu.dot_dimension_numbers<[1], [0], [0], [1], [0, 0, 1, 1], [], []>} : vector<8x160xf32>, vector<160x128xf32>, vector<8x128xf32> -> vector<8x128xf32>
    %85 = math.tanh %84 : vector<8x128xf32>
    %86 = vector.shape_cast %7 : vector<1x128xi1> to vector<1x128xi1>
    %87 = vector.broadcast %86 : vector<1x128xi1> to vector<8x128xi1>
    %88 = arith.select %87, %85, %84 : vector<8x128xi1>, vector<8x128xf32>
    %c9_i32 = arith.constant 9 : i32
    %89 = arith.index_cast %c9_i32 : i32 to index
    %c0_31 = arith.constant 0 : index
    %c0_32 = arith.constant 0 : index
    %90 = vector.load %arg2[%89, %c0_31, %c0_32] : memref<16x8x32xf32, #tpu.memory_space<vmem>>, vector<1x8x32xf32>
    %91 = vector.shape_cast %90 : vector<1x8x32xf32> to vector<8x32xf32>
    %92 = tpu.concatenate %88, %91 in 1 : vector<8x128xf32>, vector<8x32xf32> -> vector<8x160xf32>
    %cst_33 = arith.constant dense<0.000000e+00> : vector<8x128xf32>
    %93 = tpu.matmul %92, %4, %cst_33 {dimension_numbers = #tpu.dot_dimension_numbers<[1], [0], [0], [1], [0, 0, 1, 1], [], []>} : vector<8x160xf32>, vector<160x128xf32>, vector<8x128xf32> -> vector<8x128xf32>
    %94 = math.tanh %93 : vector<8x128xf32>
    %95 = vector.shape_cast %7 : vector<1x128xi1> to vector<1x128xi1>
    %96 = vector.broadcast %95 : vector<1x128xi1> to vector<8x128xi1>
    %97 = arith.select %96, %94, %93 : vector<8x128xi1>, vector<8x128xf32>
    %c10_i32 = arith.constant 10 : i32
    %98 = arith.index_cast %c10_i32 : i32 to index
    %c0_34 = arith.constant 0 : index
    %c0_35 = arith.constant 0 : index
    %99 = vector.load %arg2[%98, %c0_34, %c0_35] : memref<16x8x32xf32, #tpu.memory_space<vmem>>, vector<1x8x32xf32>
    %100 = vector.shape_cast %99 : vector<1x8x32xf32> to vector<8x32xf32>
    %101 = tpu.concatenate %97, %100 in 1 : vector<8x128xf32>, vector<8x32xf32> -> vector<8x160xf32>
    %cst_36 = arith.constant dense<0.000000e+00> : vector<8x128xf32>
    %102 = tpu.matmul %101, %4, %cst_36 {dimension_numbers = #tpu.dot_dimension_numbers<[1], [0], [0], [1], [0, 0, 1, 1], [], []>} : vector<8x160xf32>, vector<160x128xf32>, vector<8x128xf32> -> vector<8x128xf32>
    %103 = math.tanh %102 : vector<8x128xf32>
    %104 = vector.shape_cast %7 : vector<1x128xi1> to vector<1x128xi1>
    %105 = vector.broadcast %104 : vector<1x128xi1> to vector<8x128xi1>
    %106 = arith.select %105, %103, %102 : vector<8x128xi1>, vector<8x128xf32>
    %c11_i32 = arith.constant 11 : i32
    %107 = arith.index_cast %c11_i32 : i32 to index
    %c0_37 = arith.constant 0 : index
    %c0_38 = arith.constant 0 : index
    %108 = vector.load %arg2[%107, %c0_37, %c0_38] : memref<16x8x32xf32, #tpu.memory_space<vmem>>, vector<1x8x32xf32>
    %109 = vector.shape_cast %108 : vector<1x8x32xf32> to vector<8x32xf32>
    %110 = tpu.concatenate %106, %109 in 1 : vector<8x128xf32>, vector<8x32xf32> -> vector<8x160xf32>
    %cst_39 = arith.constant dense<0.000000e+00> : vector<8x128xf32>
    %111 = tpu.matmul %110, %4, %cst_39 {dimension_numbers = #tpu.dot_dimension_numbers<[1], [0], [0], [1], [0, 0, 1, 1], [], []>} : vector<8x160xf32>, vector<160x128xf32>, vector<8x128xf32> -> vector<8x128xf32>
    %112 = math.tanh %111 : vector<8x128xf32>
    %113 = vector.shape_cast %7 : vector<1x128xi1> to vector<1x128xi1>
    %114 = vector.broadcast %113 : vector<1x128xi1> to vector<8x128xi1>
    %115 = arith.select %114, %112, %111 : vector<8x128xi1>, vector<8x128xf32>
    %c12_i32 = arith.constant 12 : i32
    %116 = arith.index_cast %c12_i32 : i32 to index
    %c0_40 = arith.constant 0 : index
    %c0_41 = arith.constant 0 : index
    %117 = vector.load %arg2[%116, %c0_40, %c0_41] : memref<16x8x32xf32, #tpu.memory_space<vmem>>, vector<1x8x32xf32>
    %118 = vector.shape_cast %117 : vector<1x8x32xf32> to vector<8x32xf32>
    %119 = tpu.concatenate %115, %118 in 1 : vector<8x128xf32>, vector<8x32xf32> -> vector<8x160xf32>
    %cst_42 = arith.constant dense<0.000000e+00> : vector<8x128xf32>
    %120 = tpu.matmul %119, %4, %cst_42 {dimension_numbers = #tpu.dot_dimension_numbers<[1], [0], [0], [1], [0, 0, 1, 1], [], []>} : vector<8x160xf32>, vector<160x128xf32>, vector<8x128xf32> -> vector<8x128xf32>
    %121 = math.tanh %120 : vector<8x128xf32>
    %122 = vector.shape_cast %7 : vector<1x128xi1> to vector<1x128xi1>
    %123 = vector.broadcast %122 : vector<1x128xi1> to vector<8x128xi1>
    %124 = arith.select %123, %121, %120 : vector<8x128xi1>, vector<8x128xf32>
    %c13_i32 = arith.constant 13 : i32
    %125 = arith.index_cast %c13_i32 : i32 to index
    %c0_43 = arith.constant 0 : index
    %c0_44 = arith.constant 0 : index
    %126 = vector.load %arg2[%125, %c0_43, %c0_44] : memref<16x8x32xf32, #tpu.memory_space<vmem>>, vector<1x8x32xf32>
    %127 = vector.shape_cast %126 : vector<1x8x32xf32> to vector<8x32xf32>
    %128 = tpu.concatenate %124, %127 in 1 : vector<8x128xf32>, vector<8x32xf32> -> vector<8x160xf32>
    %cst_45 = arith.constant dense<0.000000e+00> : vector<8x128xf32>
    %129 = tpu.matmul %128, %4, %cst_45 {dimension_numbers = #tpu.dot_dimension_numbers<[1], [0], [0], [1], [0, 0, 1, 1], [], []>} : vector<8x160xf32>, vector<160x128xf32>, vector<8x128xf32> -> vector<8x128xf32>
    %130 = math.tanh %129 : vector<8x128xf32>
    %131 = vector.shape_cast %7 : vector<1x128xi1> to vector<1x128xi1>
    %132 = vector.broadcast %131 : vector<1x128xi1> to vector<8x128xi1>
    %133 = arith.select %132, %130, %129 : vector<8x128xi1>, vector<8x128xf32>
    %c14_i32 = arith.constant 14 : i32
    %134 = arith.index_cast %c14_i32 : i32 to index
    %c0_46 = arith.constant 0 : index
    %c0_47 = arith.constant 0 : index
    %135 = vector.load %arg2[%134, %c0_46, %c0_47] : memref<16x8x32xf32, #tpu.memory_space<vmem>>, vector<1x8x32xf32>
    %136 = vector.shape_cast %135 : vector<1x8x32xf32> to vector<8x32xf32>
    %137 = tpu.concatenate %133, %136 in 1 : vector<8x128xf32>, vector<8x32xf32> -> vector<8x160xf32>
    %cst_48 = arith.constant dense<0.000000e+00> : vector<8x128xf32>
    %138 = tpu.matmul %137, %4, %cst_48 {dimension_numbers = #tpu.dot_dimension_numbers<[1], [0], [0], [1], [0, 0, 1, 1], [], []>} : vector<8x160xf32>, vector<160x128xf32>, vector<8x128xf32> -> vector<8x128xf32>
    %139 = math.tanh %138 : vector<8x128xf32>
    %140 = vector.shape_cast %7 : vector<1x128xi1> to vector<1x128xi1>
    %141 = vector.broadcast %140 : vector<1x128xi1> to vector<8x128xi1>
    %142 = arith.select %141, %139, %138 : vector<8x128xi1>, vector<8x128xf32>
    %c15_i32 = arith.constant 15 : i32
    %143 = arith.index_cast %c15_i32 : i32 to index
    %c0_49 = arith.constant 0 : index
    %c0_50 = arith.constant 0 : index
    %144 = vector.load %arg2[%143, %c0_49, %c0_50] : memref<16x8x32xf32, #tpu.memory_space<vmem>>, vector<1x8x32xf32>
    %145 = vector.shape_cast %144 : vector<1x8x32xf32> to vector<8x32xf32>
    %146 = tpu.concatenate %142, %145 in 1 : vector<8x128xf32>, vector<8x32xf32> -> vector<8x160xf32>
    %cst_51 = arith.constant dense<0.000000e+00> : vector<8x128xf32>
    %147 = tpu.matmul %146, %4, %cst_51 {dimension_numbers = #tpu.dot_dimension_numbers<[1], [0], [0], [1], [0, 0, 1, 1], [], []>} : vector<8x160xf32>, vector<160x128xf32>, vector<8x128xf32> -> vector<8x128xf32>
    %148 = math.tanh %147 : vector<8x128xf32>
    %149 = vector.shape_cast %7 : vector<1x128xi1> to vector<1x128xi1>
    %150 = vector.broadcast %149 : vector<1x128xi1> to vector<8x128xi1>
    %151 = arith.select %150, %148, %147 : vector<8x128xi1>, vector<8x128xf32>
    %c16_i32 = arith.constant 16 : i32
    %c0_52 = arith.constant 0 : index
    %c0_53 = arith.constant 0 : index
    %152 = vector.load %arg6[%c0_52, %c0_53] : memref<8x128xf32, #tpu.memory_space<vmem>>, vector<8x128xf32>
    tpu.vector_store %arg6[%c0_52, %c0_53], %151 {strides = array<i32>} : memref<8x128xf32, #tpu.memory_space<vmem>>, vector<8x128xf32>,
    %c0_54 = arith.constant 0 : index
    %c0_55 = arith.constant 0 : index
    %153 = vector.load %arg5[%c0_54, %c0_55] : memref<8x128xf32, #tpu.memory_space<vmem>>, vector<8x128xf32>
    tpu.vector_store %arg5[%c0_54, %c0_55], %151 {strides = array<i32>} : memref<8x128xf32, #tpu.memory_space<vmem>>, vector<8x128xf32>,
    return
  }
  func.func @transform_0(%arg0: i32, %arg1: i32) -> (i32, i32, i32) {
    %c0_i32 = arith.constant 0 : i32
    %c0_i32_0 = arith.constant 0 : i32
    return %arg1, %arg0, %c0_i32 : i32, i32, i32
  }
  func.func @transform_1(%arg0: i32, %arg1: i32) -> (i32, i32) {
    %c0_i32 = arith.constant 0 : i32
    %c0_i32_0 = arith.constant 0 : i32
    return %arg0, %c0_i32 : i32, i32
  }
  func.func @transform_2(%arg0: i32, %arg1: i32) -> (i32, i32) {
    %c0_i32 = arith.constant 0 : i32
    %c0_i32_0 = arith.constant 0 : i32
    %c0_i32_1 = arith.constant 0 : i32
    return %c0_i32, %c0_i32_0 : i32, i32
  }
  func.func @transform_3(%arg0: i32, %arg1: i32) -> (i32, i32) {
    %c0_i32 = arith.constant 0 : i32
    %c0_i32_0 = arith.constant 0 : i32
    return %arg0, %c0_i32 : i32, i32
  }
}

</mosaic_0001>

<bundles_post_ra>
// kernel: tpu_custom_call.1
= control target key start
LH: loop header
LB: loop body
LE: loop exit
PB: predicated region body
PF: predicated region fallthrough
CT: control target
= control target key end

     0   :  { %8 = vsyncpa [#allocation4], 0  ;;  %s1469_s0 = inlined_call_operand.hbm [shape: f32[16,8,32], index: 0, kind: input, shape index: {}]   ;;  %s1470_s1 = inlined_call_operand.hbm [shape: f32[8,128], index: 1, kind: input, shape index: {}]   ;;  %s1471_s2 = inlined_call_operand.hbm [shape: f32[160,128], index: 2, kind: input, shape index: {}]   ;;  %s1472_s3 = inlined_call_operand.hbm [shape: f32[8,128], index: 3, kind: output, shape index: {}]  }
   0x1   :  { %9 = vsyncpa [#allocation7], 0  ;;  %s29_s14 = sshll.u32 %s1470_s1, 4  ;;  %s30_s14 = int_to_ptr.hbm [resolvable:$true] %s29_s14 }
   0x2   :  { %10 = vsyncpa [#allocation5], 0  ;;  %s1020_s15 = smov [#allocation6]   ;;  %s15_s19 = sshll.u32 %s1469_s0, 4  ;;  %s16_s19 = int_to_ptr.hbm [resolvable:$true] %s15_s19 }
   0x3   :  { %s31_s16 = sshll.u32 %s1020_s15, 4  ;;  %s1021_s20 = smov [#allocation3]   ;;  %s32_s16 = int_to_ptr.vmem [resolvable:$true] %s31_s16 }
   0x4   :  { %34 = dma.hbm_to_vmem [thread:$0]  %s30_s14, 128, %s32_s16, [#allocation7]  }
   0x5   :  { %s17_s21 = sshll.u32 %s1021_s20, 4  ;;  %s1022_s22 = smov 128   ;;  %s18_s21 = int_to_ptr.vmem [resolvable:$true] %s17_s21 }
   0x6   :  { %s1023_s23 = smov 8   ;;  %s39_s1 = sshll.u32 %s1471_s2, 4  ;;  %s40_s1 = int_to_ptr.hbm [resolvable:$true] %s39_s1 }
   0x7   :  { %23 = dma.hbm_to_vmem [thread:$0]  %s16_s19, 2048, %s18_s21, [#allocation4], %s1022_s22, %s1022_s22, %s1023_s23  }
   0x8   :  { %s1024_s26 = smov [#allocation8]  }
   0x9   :  { %s41_s27 = sshll.u32 %s1024_s26, 4  ;;  %s42_s27 = int_to_ptr.vmem [resolvable:$true] %s41_s27 }
   0xa   :  { %47 = dma.hbm_to_vmem [thread:$0]  %s40_s1, 2560, %s42_s27, [#allocation7], %s1022_s22, %s1022_s22, %s1023_s23  }
   0xb   :  { %1014 = dma.done.wait [#allocation4], 2048  }
   0xc   :  { %1015 = vsyncadd [#allocation4], 4294965248 }
   0xd   :  { %1016 = dma.done.wait [#allocation7], 2688  }
   0xe   :  { %1017 = vsyncadd [#allocation7], 4294964608  ;;  %v1055_v0 = vld [vmem:[#allocation8 + $0x78] sm:$0xff]  ;;  %v1057_v1 = vld [vmem:[#allocation8 + $0x70] sm:$0xff]  ;;  %vm91_vm0 = vcmask 261120   ;;  %v87_v24 = vlaneseq  ;;  %s1025_s0 = smov [#allocation9]  }
   0xf   :  { %95 = vmatpush.msra.mxu0 %v1055_v0  ;;  %144 = vmatpush.msra.mxu2 %v1055_v0  ;;  %v1061_v2 = vld [vmem:[#allocation8 + $0x68] sm:$0xff]  ;;  %v1065_v3 = vld [vmem:[#allocation8 + $0x60] sm:$0xff]  ;;  %v1067_v4 = vld [vmem:[#allocation8 + $0x98] sm:$0xff]  ;;  %s851_s2 = sshll.u32 %s1025_s0, 4  ;;  %s853_s30 = sshll.u32 %s1472_s3, 4  ;;  %s852_s2 = int_to_ptr.vmem [resolvable:$true] %s851_s2  ;;  %s854_s30 = int_to_ptr.hbm [resolvable:$true] %s853_s30 }
  0x10   :  { %127 = vmatpush.msra.mxu1 %v1067_v4  ;;  %v1071_v5 = vld [vmem:[#allocation8 + $0x90] sm:$0xff]  ;;  %v1073_v6 = vld [vmem:[#allocation8 + $0x58] sm:$0xff]  ;;  %v1075_v7 = vld [vmem:[#allocation8 + $0x88] sm:$0xff]  ;;  %176 = vmatpush.msra.mxu3 %v1067_v4  ;;  %v1197_v27 = vand.u32 127, %v87_v24 }
  0x11   :  { %96 = vmatpush.msra.mxu0 %v1057_v1  ;;  %145 = vmatpush.msra.mxu2 %v1057_v1  ;;  %v1081_v8 = vld [vmem:[#allocation8 + $0x50] sm:$0xff]  ;;  %v1083_v9 = vld [vmem:[#allocation8 + $0x80] sm:$0xff]  ;;  %v90_v10 = vld [vmem:[#allocation3] sm:$0xff] }
  0x12   :  { %128 = vmatpush.msra.mxu1 %v1071_v5  ;;  %177 = vmatpush.msra.mxu3 %v1071_v5  ;;  %v1089_v11 = vld [vmem:[#allocation8 + $0x48] sm:$0xff]  ;;  %v1095_v12 = vld [vmem:[#allocation8 + $0x40] sm:$0xff]  ;;  %v1101_v13 = vld [vmem:[#allocation8 + $0x38] sm:$0xff]  ;;  %vm89_vm1 = vcmp.lt.s32.totalorder %v1197_v27, 64 }
  0x13   :  { %97 = vmatpush.msra.mxu0 %v1061_v2  ;;  %146 = vmatpush.msra.mxu2 %v1061_v2  ;;  %v1107_v14 = vld [vmem:[#allocation8 + $0x30] sm:$0xff]  ;;  %v1113_v15 = vld [vmem:[#allocation8 + $0x28] sm:$0xff]  ;;  %v1119_v16 = vld [vmem:[#allocation8 + $0x20] sm:$0xff] }
  0x14   :  { %129 = vmatpush.msra.mxu1 %v1075_v7  ;;  %178 = vmatpush.msra.mxu3 %v1075_v7  ;;  %v1125_v17 = vld [vmem:[#allocation8 + $0x18] sm:$0xff]  ;;  %v1130_v18 = vld [vmem:[#allocation8 + $0x10] sm:$0xff]  ;;  %v1135_v19 = vld [vmem:[#allocation8 + $0x8] sm:$0xff] }
  0x15   :  { %98 = vmatpush.msra.mxu0 %v1065_v3  ;;  %147 = vmatpush.msra.mxu2 %v1065_v3  ;;  %v1140_v20 = vld [vmem:[#allocation8] sm:$0xff]  ;;  %v64_v21 = vld [vmem:[#allocation6] sm:$0xff]  ;;  %v187_v30 = vld [vmem:[#allocation3 + $0x10] sm:$0xff] }
  0x16   :  { %130 = vmatpush.msra.mxu1 %v1083_v9  ;;  %179 = vmatpush.msra.mxu3 %v1083_v9  ;;  %v140_v22 = vld [vmem:[#allocation3 + $0x8] sm:$0xff]  ;;  %v234_v36 = vld [vmem:[#allocation3 + $0x18] sm:$0xff]  ;;  %v281_v47 = vld [vmem:[#allocation3 + $0x20] sm:$0xff] }
  0x17   :  { %99 = vmatpush.msra.mxu0 %v1073_v6  ;;  %148 = vmatpush.msra.mxu2 %v1073_v6  ;;  %v328_v48 = vld [vmem:[#allocation3 + $0x28] sm:$0xff]  ;;  %v375_v54 = vld [vmem:[#allocation3 + $0x30] sm:$0xff]  ;;  %v422_v60 = vld [vmem:[#allocation3 + $0x38] sm:$0xff] }
  0x18   :  { %864 = vmatmul.msk.f32.vlgmr.msra.gmra.mxu1 %vm91_vm0, %v90_v10  ;;  %223 = vmatpush.msrb.mxu3 %v1067_v4 }
  0x19   :  { %100 = vmatpush.msra.mxu0 %v1081_v8  ;;  %149 = vmatpush.msra.mxu2 %v1081_v8 }
  0x1a   :  { %191 = vmatpush.msrb.mxu1 %v1055_v0  ;;  %224 = vmatpush.msrb.mxu3 %v1071_v5 }
  0x1b   :  { %101 = vmatpush.msra.mxu0 %v1089_v11  ;;  %150 = vmatpush.msra.mxu2 %v1089_v11 }
  0x1c   :  { %192 = vmatpush.msrb.mxu1 %v1057_v1  ;;  %225 = vmatpush.msrb.mxu3 %v1075_v7 }
  0x1d   :  { %102 = vmatpush.msra.mxu0 %v1095_v12  ;;  %151 = vmatpush.msra.mxu2 %v1095_v12 }
  0x1e   :  { %193 = vmatpush.msrb.mxu1 %v1061_v2  ;;  %226 = vmatpush.msrb.mxu3 %v1083_v9 }
  0x1f   :  { %103 = vmatpush.msra.mxu0 %v1101_v13  ;;  %152 = vmatpush.msra.mxu2 %v1101_v13 }
  0x20   :  { %194 = vmatpush.msrb.mxu1 %v1065_v3  ;;  %865 = vmatmul.msk.f32.vlgmr.msra.gmra.mxu3 %vm91_vm0, %v140_v22  ;;  %v469_v22 = vld [vmem:[#allocation3 + $0x40] sm:$0xff] }
  0x21   :  { %104 = vmatpush.msra.mxu0 %v1107_v14  ;;  %153 = vmatpush.msra.mxu2 %v1107_v14 }
  0x22   :  { %195 = vmatpush.msrb.mxu1 %v1073_v6  ;;  %238 = vmatpush.msra.mxu3 %v1055_v0 }
  0x23   :  { %105 = vmatpush.msra.mxu0 %v1113_v15  ;;  %154 = vmatpush.msra.mxu2 %v1113_v15 }
  0x24   :  { %196 = vmatpush.msrb.mxu1 %v1081_v8  ;;  %239 = vmatpush.msra.mxu3 %v1057_v1 }
  0x25   :  { %106 = vmatpush.msra.mxu0 %v1119_v16  ;;  %155 = vmatpush.msra.mxu2 %v1119_v16 }
  0x26   :  { %197 = vmatpush.msrb.mxu1 %v1089_v11  ;;  %240 = vmatpush.msra.mxu3 %v1061_v2 }
  0x27   :  { %107 = vmatpush.msra.mxu0 %v1125_v17  ;;  %156 = vmatpush.msra.mxu2 %v1125_v17 }
  0x28   :  { %198 = vmatpush.msrb.mxu1 %v1095_v12  ;;  %241 = vmatpush.msra.mxu3 %v1065_v3 }
  0x29   :  { %108 = vmatpush.msra.mxu0 %v1130_v18  ;;  %157 = vmatpush.msra.mxu2 %v1130_v18 }
  0x2a   :  { %199 = vmatpush.msrb.mxu1 %v1101_v13  ;;  %242 = vmatpush.msra.mxu3 %v1073_v6 }
  0x2b   :  { %109 = vmatpush.msra.mxu0 %v1135_v19  ;;  %158 = vmatpush.msra.mxu2 %v1135_v19 }
  0x2c   :  { %200 = vmatpush.msrb.mxu1 %v1107_v14  ;;  %243 = vmatpush.msra.mxu3 %v1081_v8 }
  0x2d   :  { %110 = vmatpush.msra.mxu0 %v1140_v20  ;;  %159 = vmatpush.msra.mxu2 %v1140_v20 }
  0x2e   :  { %111 = vmatmul.f32.vlgmr.msra.gmra.mxu0 %v64_v21  ;;  %201 = vmatpush.msrb.mxu1 %v1113_v15 }
  0x2f   :  { %285 = vmatpush.msrb.mxu2 %v1055_v0  ;;  %364 = vmatpush.msrb.mxu0 %v1067_v4 }
  0x30   :  { %202 = vmatpush.msrb.mxu1 %v1119_v16  ;;  %244 = vmatpush.msra.mxu3 %v1089_v11 }
  0x31   :  { %286 = vmatpush.msrb.mxu2 %v1057_v1  ;;  %365 = vmatpush.msrb.mxu0 %v1071_v5 }
  0x32   :  { %203 = vmatpush.msrb.mxu1 %v1125_v17  ;;  %245 = vmatpush.msra.mxu3 %v1095_v12 }
  0x33   :  { %287 = vmatpush.msrb.mxu2 %v1061_v2  ;;  %366 = vmatpush.msrb.mxu0 %v1075_v7 }
  0x34   :  { %204 = vmatpush.msrb.mxu1 %v1130_v18  ;;  %246 = vmatpush.msra.mxu3 %v1101_v13 }
  0x35   :  { %288 = vmatpush.msrb.mxu2 %v1065_v3  ;;  %367 = vmatpush.msrb.mxu0 %v1083_v9 }
  0x36   :  { %205 = vmatpush.msrb.mxu1 %v1135_v19  ;;  %247 = vmatpush.msra.mxu3 %v1107_v14 }
  0x37   :  { %289 = vmatpush.msrb.mxu2 %v1073_v6  ;;  %411 = vmatpush.msra.mxu0 %v1067_v4 }
  0x38   :  { %206 = vmatpush.msrb.mxu1 %v1140_v20  ;;  %248 = vmatpush.msra.mxu3 %v1113_v15 }
  0x39   :  { %290 = vmatpush.msrb.mxu2 %v1081_v8  ;;  %412 = vmatpush.msra.mxu0 %v1071_v5 }
  0x3a   :  { %270 = vmatpush.msra.mxu1 %v1067_v4  ;;  %249 = vmatpush.msra.mxu3 %v1119_v16 }
  0x3b   :  { %291 = vmatpush.msrb.mxu2 %v1089_v11  ;;  %413 = vmatpush.msra.mxu0 %v1075_v7 }
  0x3c   :  { %271 = vmatpush.msra.mxu1 %v1071_v5  ;;  %250 = vmatpush.msra.mxu3 %v1125_v17 }
  0x3d   :  { %292 = vmatpush.msrb.mxu2 %v1095_v12  ;;  %414 = vmatpush.msra.mxu0 %v1083_v9 }
  0x3e   :  { %272 = vmatpush.msra.mxu1 %v1075_v7  ;;  %251 = vmatpush.msra.mxu3 %v1130_v18 }
  0x3f   :  { %293 = vmatpush.msrb.mxu2 %v1101_v13  ;;  %866 = vmatmul.msk.f32.vlgmr.msrb.gmra.mxu3 %vm91_vm0, %v187_v30 }
  0x40   :  { %273 = vmatpush.msra.mxu1 %v1083_v9  ;;  %252 = vmatpush.msra.mxu3 %v1135_v19 }
  0x41   :  { %294 = vmatpush.msrb.mxu2 %v1107_v14  ;;  %869 = vmatmul.msk.f32.vlgmr.msrb.gmra.mxu0 %vm91_vm0, %v328_v48 }
  0x42   :  { %253 = vmatpush.msra.mxu3 %v1140_v20  ;;  %426 = vmatpush.msrb.mxu0 %v1055_v0 }
  0x43   :  { %295 = vmatpush.msrb.mxu2 %v1113_v15 }
  0x44   :  { %379 = vmatpush.msrb.mxu3 %v1055_v0  ;;  %427 = vmatpush.msrb.mxu0 %v1057_v1 }
  0x45   :  { %296 = vmatpush.msrb.mxu2 %v1119_v16 }
  0x46   :  { %380 = vmatpush.msrb.mxu3 %v1057_v1  ;;  %428 = vmatpush.msrb.mxu0 %v1061_v2 }
  0x47   :  { %297 = vmatpush.msrb.mxu2 %v1125_v17 }
  0x48   :  { %381 = vmatpush.msrb.mxu3 %v1061_v2  ;;  %429 = vmatpush.msrb.mxu0 %v1065_v3 }
  0x49   :  { %298 = vmatpush.msrb.mxu2 %v1130_v18  ;;  %870 = vmatmul.msk.f32.vlgmr.msra.gmra.mxu0 %vm91_vm0, %v375_v54 }
  0x4a   :  { %382 = vmatpush.msrb.mxu3 %v1065_v3  ;;  %430 = vmatpush.msrb.mxu0 %v1073_v6 }
  0x4b   :  { %299 = vmatpush.msrb.mxu2 %v1135_v19 }
  0x4c   :  { %383 = vmatpush.msrb.mxu3 %v1073_v6  ;;  %431 = vmatpush.msrb.mxu0 %v1081_v8 }
  0x4d   :  { %300 = vmatpush.msrb.mxu2 %v1140_v20 }
  0x4e   :  { %384 = vmatpush.msrb.mxu3 %v1081_v8  ;;  %432 = vmatpush.msrb.mxu0 %v1089_v11 }
  0x50   :  { %385 = vmatpush.msrb.mxu3 %v1089_v11  ;;  %433 = vmatpush.msrb.mxu0 %v1095_v12 }
  0x52   :  { %386 = vmatpush.msrb.mxu3 %v1095_v12  ;;  %434 = vmatpush.msrb.mxu0 %v1101_v13 }
  0x54   :  { %387 = vmatpush.msrb.mxu3 %v1101_v13  ;;  %435 = vmatpush.msrb.mxu0 %v1107_v14 }
  0x56   :  { %388 = vmatpush.msrb.mxu3 %v1107_v14  ;;  %436 = vmatpush.msrb.mxu0 %v1113_v15 }
  0x58   :  { %389 = vmatpush.msrb.mxu3 %v1113_v15  ;;  %437 = vmatpush.msrb.mxu0 %v1119_v16 }
  0x5a   :  { %390 = vmatpush.msrb.mxu3 %v1119_v16  ;;  %438 = vmatpush.msrb.mxu0 %v1125_v17 }
  0x5c   :  { %391 = vmatpush.msrb.mxu3 %v1125_v17  ;;  %439 = vmatpush.msrb.mxu0 %v1130_v18 }
  0x5e   :  { %392 = vmatpush.msrb.mxu3 %v1130_v18  ;;  %440 = vmatpush.msrb.mxu0 %v1135_v19 }
  0x60   :  { %393 = vmatpush.msrb.mxu3 %v1135_v19  ;;  %441 = vmatpush.msrb.mxu0 %v1140_v20 }
  0x62   :  { %394 = vmatpush.msrb.mxu3 %v1140_v20  ;;  %599 = vmatpush.msra.mxu0 %v1067_v4 }
  0x64   :  { %600 = vmatpush.msra.mxu0 %v1071_v5 }
  0x66   :  { %601 = vmatpush.msra.mxu0 %v1075_v7 }
  0x68   :  { %602 = vmatpush.msra.mxu0 %v1083_v9 }
  0x95   :  { %v132_v23 = vpop.f32.mrf.mxu1 }
  0xa3   :  { %v181_v31 = vpop.f32.mrf.mxu3 }
  0xab   :  { %v112_v25 = vpop.f32.mrf.mxu0 }
  0xac   :  { %v133_v26 = vadd.f32 %v132_v23, %v112_v25 }
  0xae   :  { %886 = vtanh.f32 %v133_v26 }
  0xb4   :  { %v887_v28 = vpop.eup %886 }
  0xb5   :  { %v138_v29 = vsel %vm89_vm1, %v887_v28, %v133_v26 }
  0xb6   :  { %160 = vmatmul.f32.vlgmr.msra.gmra.mxu2 %v138_v29  ;;  %v516_v29 = vld [vmem:[#allocation3 + $0x48] sm:$0xff] }
  0xb7   :  { %317 = vmatpush.msra.mxu2 %v1067_v4 }
  0xb9   :  { %318 = vmatpush.msra.mxu2 %v1071_v5 }
  0xbb   :  { %319 = vmatpush.msra.mxu2 %v1075_v7 }
  0xbd   :  { %320 = vmatpush.msra.mxu2 %v1083_v9 }
  0xbe   :  { %v369_v55 = vpop.f32.mrf.mxu0 }
  0xc2   :  { %v228_v37 = vpop.f32.mrf.mxu3 }
  0xc6   :  { %v416_v61 = vpop.f32.mrf.mxu0 }
 0x139   :  { %v161_v32 = vpop.f32.mrf.mxu2 }
 0x13a   :  { %v182_v33 = vadd.f32 %v181_v31, %v161_v32 }
 0x13c   :  { %888 = vtanh.f32 %v182_v33 }
 0x142   :  { %v889_v34 = vpop.eup %888 }
 0x143   :  { %v185_v35 = vsel %vm89_vm1, %v889_v34, %v182_v33 }
 0x144   :  { %207 = vmatmul.f32.vlgmr.msrb.gmra.mxu1 %v185_v35  ;;  %v563_v35 = vld [vmem:[#allocation3 + $0x50] sm:$0xff] }
 0x145   :  { %332 = vmatpush.msrb.mxu1 %v1055_v0 }
 0x147   :  { %333 = vmatpush.msrb.mxu1 %v1057_v1 }
 0x149   :  { %334 = vmatpush.msrb.mxu1 %v1061_v2 }
 0x14b   :  { %335 = vmatpush.msrb.mxu1 %v1065_v3 }
 0x14c   :  { %867 = vmatmul.msk.f32.vlgmr.msra.gmra.mxu1 %vm91_vm0, %v234_v36 }
 0x14d   :  { %336 = vmatpush.msrb.mxu1 %v1073_v6 }
 0x14f   :  { %337 = vmatpush.msrb.mxu1 %v1081_v8 }
 0x151   :  { %338 = vmatpush.msrb.mxu1 %v1089_v11 }
 0x153   :  { %339 = vmatpush.msrb.mxu1 %v1095_v12 }
 0x155   :  { %340 = vmatpush.msrb.mxu1 %v1101_v13 }
 0x157   :  { %341 = vmatpush.msrb.mxu1 %v1107_v14 }
 0x159   :  { %342 = vmatpush.msrb.mxu1 %v1113_v15 }
 0x15b   :  { %343 = vmatpush.msrb.mxu1 %v1119_v16 }
 0x15d   :  { %344 = vmatpush.msrb.mxu1 %v1125_v17 }
 0x15f   :  { %345 = vmatpush.msrb.mxu1 %v1130_v18 }
 0x161   :  { %346 = vmatpush.msrb.mxu1 %v1135_v19 }
 0x163   :  { %347 = vmatpush.msrb.mxu1 %v1140_v20 }
 0x165   :  { %473 = vmatpush.msra.mxu1 %v1055_v0 }
 0x167   :  { %474 = vmatpush.msra.mxu1 %v1057_v1 }
 0x169   :  { %475 = vmatpush.msra.mxu1 %v1061_v2 }
 0x16b   :  { %476 = vmatpush.msra.mxu1 %v1065_v3 }
 0x16d   :  { %477 = vmatpush.msra.mxu1 %v1073_v6 }
 0x16f   :  { %478 = vmatpush.msra.mxu1 %v1081_v8 }
 0x171   :  { %479 = vmatpush.msra.mxu1 %v1089_v11 }
 0x173   :  { %480 = vmatpush.msra.mxu1 %v1095_v12 }
 0x175   :  { %481 = vmatpush.msra.mxu1 %v1101_v13 }
 0x177   :  { %482 = vmatpush.msra.mxu1 %v1107_v14 }
 0x179   :  { %483 = vmatpush.msra.mxu1 %v1113_v15 }
 0x17b   :  { %484 = vmatpush.msra.mxu1 %v1119_v16 }
 0x17d   :  { %485 = vmatpush.msra.mxu1 %v1125_v17 }
 0x17f   :  { %486 = vmatpush.msra.mxu1 %v1130_v18 }
 0x181   :  { %487 = vmatpush.msra.mxu1 %v1135_v19 }
 0x183   :  { %488 = vmatpush.msra.mxu1 %v1140_v20 }
 0x1c1   :  { %v208_v38 = vpop.f32.mrf.mxu1 }
 0x1c2   :  { %v229_v39 = vadd.f32 %v228_v37, %v208_v38 }
 0x1c4   :  { %890 = vtanh.f32 %v229_v39 }
 0x1c9   :  { %v275_v42 = vpop.f32.mrf.mxu1 }
 0x1ca   :  { %v891_v40 = vpop.eup %890 }
 0x1cb   :  { %v232_v41 = vsel %vm89_vm1, %v891_v40, %v229_v39 }
 0x1cc   :  { %254 = vmatmul.f32.vlgmr.msra.gmra.mxu3 %v232_v41  ;;  %v610_v41 = vld [vmem:[#allocation3 + $0x58] sm:$0xff] }
 0x1cd   :  { %552 = vmatpush.msra.mxu3 %v1067_v4 }
 0x1cf   :  { %553 = vmatpush.msra.mxu3 %v1071_v5 }
 0x1d1   :  { %554 = vmatpush.msra.mxu3 %v1075_v7 }
 0x1d3   :  { %555 = vmatpush.msra.mxu3 %v1083_v9 }
 0x24f   :  { %v255_v43 = vpop.f32.mrf.mxu3 }
 0x250   :  { %v276_v44 = vadd.f32 %v275_v42, %v255_v43 }
 0x252   :  { %892 = vtanh.f32 %v276_v44 }
 0x258   :  { %v893_v45 = vpop.eup %892 }
 0x259   :  { %v279_v46 = vsel %vm89_vm1, %v893_v45, %v276_v44 }
 0x25a   :  { %301 = vmatmul.f32.vlgmr.msrb.gmra.mxu2 %v279_v46 }
 0x25b   :  { %458 = vmatpush.msrb.mxu2 %v1067_v4 }
 0x25d   :  { %459 = vmatpush.msrb.mxu2 %v1071_v5 }
 0x25f   :  { %460 = vmatpush.msrb.mxu2 %v1075_v7 }
 0x261   :  { %461 = vmatpush.msrb.mxu2 %v1083_v9 }
 0x262   :  { %868 = vmatmul.msk.f32.vlgmr.msra.gmra.mxu2 %vm91_vm0, %v281_v47 }
 0x263   :  { %505 = vmatpush.msra.mxu2 %v1067_v4 }
 0x265   :  { %506 = vmatpush.msra.mxu2 %v1071_v5 }
 0x267   :  { %507 = vmatpush.msra.mxu2 %v1075_v7 }
 0x269   :  { %508 = vmatpush.msra.mxu2 %v1083_v9 }
 0x26a   :  { %871 = vmatmul.msk.f32.vlgmr.msrb.gmra.mxu2 %vm91_vm0, %v422_v60 }
 0x26b   :  { %520 = vmatpush.msrb.mxu2 %v1055_v0 }
 0x26d   :  { %521 = vmatpush.msrb.mxu2 %v1057_v1 }
 0x26f   :  { %522 = vmatpush.msrb.mxu2 %v1061_v2 }
 0x271   :  { %523 = vmatpush.msrb.mxu2 %v1065_v3 }
 0x272   :  { %872 = vmatmul.msk.f32.vlgmr.msra.gmra.mxu2 %vm91_vm0, %v469_v22 }
 0x273   :  { %524 = vmatpush.msrb.mxu2 %v1073_v6 }
 0x275   :  { %525 = vmatpush.msrb.mxu2 %v1081_v8 }
 0x277   :  { %526 = vmatpush.msrb.mxu2 %v1089_v11 }
 0x279   :  { %527 = vmatpush.msrb.mxu2 %v1095_v12 }
 0x27b   :  { %528 = vmatpush.msrb.mxu2 %v1101_v13 }
 0x27d   :  { %529 = vmatpush.msrb.mxu2 %v1107_v14 }
 0x27f   :  { %530 = vmatpush.msrb.mxu2 %v1113_v15 }
 0x281   :  { %531 = vmatpush.msrb.mxu2 %v1119_v16 }
 0x283   :  { %532 = vmatpush.msrb.mxu2 %v1125_v17 }
 0x285   :  { %533 = vmatpush.msrb.mxu2 %v1130_v18 }
 0x287   :  { %534 = vmatpush.msrb.mxu2 %v1135_v19 }
 0x289   :  { %535 = vmatpush.msrb.mxu2 %v1140_v20 }
 0x28b   :  { %693 = vmatpush.msra.mxu2 %v1067_v4 }
 0x28d   :  { %694 = vmatpush.msra.mxu2 %v1071_v5 }
 0x28f   :  { %695 = vmatpush.msra.mxu2 %v1075_v7 }
 0x291   :  { %696 = vmatpush.msra.mxu2 %v1083_v9 }
 0x2dd   :  { %v302_v49 = vpop.f32.mrf.mxu2 }
 0x2e5   :  { %v322_v50 = vpop.f32.mrf.mxu2 }
 0x2e6   :  { %v323_v51 = vadd.f32 %v322_v50, %v302_v49 }
 0x2e8   :  { %894 = vtanh.f32 %v323_v51 }
 0x2ed   :  { %v463_v23 = vpop.f32.mrf.mxu2 }
 0x2ee   :  { %v895_v52 = vpop.eup %894 }
 0x2ef   :  { %v326_v53 = vsel %vm89_vm1, %v895_v52, %v323_v51 }
 0x2f0   :  { %348 = vmatmul.f32.vlgmr.msrb.gmra.mxu1 %v326_v53 }
 0x2f1   :  { %646 = vmatpush.msrb.mxu1 %v1067_v4 }
 0x2f3   :  { %647 = vmatpush.msrb.mxu1 %v1071_v5 }
 0x2f5   :  { %648 = vmatpush.msrb.mxu1 %v1075_v7  ;;  %v510_v30 = vpop.f32.mrf.mxu2 }
 0x2f7   :  { %649 = vmatpush.msrb.mxu1 %v1083_v9 }
 0x36d   :  { %v349_v56 = vpop.f32.mrf.mxu1 }
 0x36e   :  { %v370_v57 = vadd.f32 %v369_v55, %v349_v56 }
 0x370   :  { %896 = vtanh.f32 %v370_v57 }
 0x376   :  { %v897_v58 = vpop.eup %896 }
 0x377   :  { %v373_v59 = vsel %vm89_vm1, %v897_v58, %v370_v57 }
 0x378   :  { %395 = vmatmul.f32.vlgmr.msrb.gmra.mxu3 %v373_v59 }
 0x379   :  { %567 = vmatpush.msrb.mxu3 %v1055_v0 }
 0x37b   :  { %568 = vmatpush.msrb.mxu3 %v1057_v1 }
 0x37d   :  { %569 = vmatpush.msrb.mxu3 %v1061_v2 }
 0x37f   :  { %570 = vmatpush.msrb.mxu3 %v1065_v3 }
 0x380   :  { %873 = vmatmul.msk.f32.vlgmr.msra.gmra.mxu3 %vm91_vm0, %v516_v29 }
 0x381   :  { %571 = vmatpush.msrb.mxu3 %v1073_v6 }
 0x383   :  { %572 = vmatpush.msrb.mxu3 %v1081_v8 }
 0x385   :  { %573 = vmatpush.msrb.mxu3 %v1089_v11 }
 0x387   :  { %574 = vmatpush.msrb.mxu3 %v1095_v12 }
 0x389   :  { %575 = vmatpush.msrb.mxu3 %v1101_v13 }
 0x38b   :  { %576 = vmatpush.msrb.mxu3 %v1107_v14 }
 0x38d   :  { %577 = vmatpush.msrb.mxu3 %v1113_v15 }
 0x38f   :  { %578 = vmatpush.msrb.mxu3 %v1119_v16 }
 0x391   :  { %579 = vmatpush.msrb.mxu3 %v1125_v17 }
 0x393   :  { %580 = vmatpush.msrb.mxu3 %v1130_v18 }
 0x395   :  { %581 = vmatpush.msrb.mxu3 %v1135_v19 }
 0x397   :  { %582 = vmatpush.msrb.mxu3 %v1140_v20 }
 0x399   :  { %740 = vmatpush.msra.mxu3 %v1067_v4 }
 0x39b   :  { %741 = vmatpush.msra.mxu3 %v1071_v5 }
 0x39d   :  { %742 = vmatpush.msra.mxu3 %v1075_v7 }
 0x39f   :  { %743 = vmatpush.msra.mxu3 %v1083_v9 }
 0x3fb   :  { %v396_v62 = vpop.f32.mrf.mxu3 }
 0x3fc   :  { %v417_v63 = vadd.f32 %v416_v61, %v396_v62 }
 0x3fe   :  { %898 = vtanh.f32 %v417_v63 }
 0x403   :  { %v557_v36 = vpop.f32.mrf.mxu3 }
 0x404   :  { %v899_v10 = vpop.eup %898 }
 0x405   :  { %v420_v21 = vsel %vm89_vm1, %v899_v10, %v417_v63 }
 0x406   :  { %442 = vmatmul.f32.vlgmr.msrb.gmra.mxu0 %v420_v21 }
 0x407   :  { %614 = vmatpush.msrb.mxu0 %v1055_v0 }
 0x409   :  { %615 = vmatpush.msrb.mxu0 %v1057_v1 }
 0x40b   :  { %616 = vmatpush.msrb.mxu0 %v1061_v2 }
 0x40d   :  { %617 = vmatpush.msrb.mxu0 %v1065_v3 }
 0x40e   :  { %874 = vmatmul.msk.f32.vlgmr.msra.gmra.mxu0 %vm91_vm0, %v563_v35 }
 0x40f   :  { %618 = vmatpush.msrb.mxu0 %v1073_v6 }
 0x411   :  { %619 = vmatpush.msrb.mxu0 %v1081_v8 }
 0x413   :  { %620 = vmatpush.msrb.mxu0 %v1089_v11 }
 0x415   :  { %621 = vmatpush.msrb.mxu0 %v1095_v12 }
 0x417   :  { %622 = vmatpush.msrb.mxu0 %v1101_v13 }
 0x419   :  { %623 = vmatpush.msrb.mxu0 %v1107_v14 }
 0x41b   :  { %624 = vmatpush.msrb.mxu0 %v1113_v15 }
 0x41d   :  { %625 = vmatpush.msrb.mxu0 %v1119_v16 }
 0x41f   :  { %626 = vmatpush.msrb.mxu0 %v1125_v17 }
 0x421   :  { %627 = vmatpush.msrb.mxu0 %v1130_v18 }
 0x423   :  { %628 = vmatpush.msrb.mxu0 %v1135_v19 }
 0x425   :  { %629 = vmatpush.msrb.mxu0 %v1140_v20 }
 0x427   :  { %787 = vmatpush.msra.mxu0 %v1067_v4 }
 0x429   :  { %788 = vmatpush.msra.mxu0 %v1071_v5 }
 0x42b   :  { %789 = vmatpush.msra.mxu0 %v1075_v7 }
 0x42d   :  { %790 = vmatpush.msra.mxu0 %v1083_v9 }
 0x483   :  { %v443_v24 = vpop.f32.mrf.mxu0 }
 0x484   :  { %v464_v25 = vadd.f32 %v463_v23, %v443_v24 }
 0x486   :  { %900 = vtanh.f32 %v464_v25 }
 0x48b   :  { %v604_v42 = vpop.f32.mrf.mxu0 }
 0x48c   :  { %v901_v26 = vpop.eup %900 }
 0x48d   :  { %v467_v28 = vsel %vm89_vm1, %v901_v26, %v464_v25 }
 0x48e   :  { %489 = vmatmul.f32.vlgmr.msra.gmra.mxu1 %v467_v28 }
 0x48f   :  { %661 = vmatpush.msra.mxu1 %v1055_v0 }
 0x491   :  { %662 = vmatpush.msra.mxu1 %v1057_v1 }
 0x493   :  { %663 = vmatpush.msra.mxu1 %v1061_v2 }
 0x495   :  { %664 = vmatpush.msra.mxu1 %v1065_v3 }
 0x496   :  { %875 = vmatmul.msk.f32.vlgmr.msrb.gmra.mxu1 %vm91_vm0, %v610_v41 }
 0x497   :  { %665 = vmatpush.msra.mxu1 %v1073_v6 }
 0x499   :  { %666 = vmatpush.msra.mxu1 %v1081_v8 }
 0x49b   :  { %667 = vmatpush.msra.mxu1 %v1089_v11 }
 0x49d   :  { %668 = vmatpush.msra.mxu1 %v1095_v12 }
 0x49f   :  { %669 = vmatpush.msra.mxu1 %v1101_v13 }
 0x4a1   :  { %670 = vmatpush.msra.mxu1 %v1107_v14 }
 0x4a3   :  { %671 = vmatpush.msra.mxu1 %v1113_v15 }
 0x4a5   :  { %672 = vmatpush.msra.mxu1 %v1119_v16 }
 0x4a7   :  { %673 = vmatpush.msra.mxu1 %v1125_v17 }
 0x4a9   :  { %674 = vmatpush.msra.mxu1 %v1130_v18 }
 0x4ab   :  { %675 = vmatpush.msra.mxu1 %v1135_v19 }
 0x4ad   :  { %676 = vmatpush.msra.mxu1 %v1140_v20 }
 0x4af   :  { %834 = vmatpush.msrb.mxu1 %v1067_v4 }
 0x4b1   :  { %835 = vmatpush.msrb.mxu1 %v1071_v5 }
 0x4b3   :  { %836 = vmatpush.msrb.mxu1 %v1075_v7 }
 0x4b5   :  { %837 = vmatpush.msrb.mxu1 %v1083_v9 }
 0x50b   :  { %v490_v31 = vpop.f32.mrf.mxu1 }
 0x50c   :  { %v511_v32 = vadd.f32 %v510_v30, %v490_v31 }
 0x50e   :  { %902 = vtanh.f32 %v511_v32 }
 0x514   :  { %v903_v33 = vpop.eup %902 }
 0x515   :  { %v514_v34 = vsel %vm89_vm1, %v903_v33, %v511_v32 }
 0x516   :  { %536 = vmatmul.f32.vlgmr.msrb.gmra.mxu2 %v514_v34 }
 0x517   :  { %708 = vmatpush.msrb.mxu2 %v1055_v0 }
 0x519   :  { %709 = vmatpush.msrb.mxu2 %v1057_v1 }
 0x51b   :  { %710 = vmatpush.msrb.mxu2 %v1061_v2 }
 0x51d   :  { %711 = vmatpush.msrb.mxu2 %v1065_v3 }
 0x51f   :  { %712 = vmatpush.msrb.mxu2 %v1073_v6 }
 0x521   :  { %713 = vmatpush.msrb.mxu2 %v1081_v8 }
 0x523   :  { %714 = vmatpush.msrb.mxu2 %v1089_v11 }
 0x525   :  { %715 = vmatpush.msrb.mxu2 %v1095_v12 }
 0x527   :  { %716 = vmatpush.msrb.mxu2 %v1101_v13 }
 0x529   :  { %717 = vmatpush.msrb.mxu2 %v1107_v14 }
 0x52b   :  { %718 = vmatpush.msrb.mxu2 %v1113_v15 }
 0x52d   :  { %719 = vmatpush.msrb.mxu2 %v1119_v16 }
 0x52f   :  { %720 = vmatpush.msrb.mxu2 %v1125_v17 }
 0x531   :  { %721 = vmatpush.msrb.mxu2 %v1130_v18 }
 0x533   :  { %722 = vmatpush.msrb.mxu2 %v1135_v19 }
 0x535   :  { %723 = vmatpush.msrb.mxu2 %v1140_v20 }
 0x599   :  { %v537_v37 = vpop.f32.mrf.mxu2 }
 0x59a   :  { %v558_v38 = vadd.f32 %v557_v36, %v537_v37 }
 0x59c   :  { %904 = vtanh.f32 %v558_v38 }
 0x5a2   :  { %v905_v39 = vpop.eup %904 }
 0x5a3   :  { %v561_v40 = vsel %vm89_vm1, %v905_v39, %v558_v38 }
 0x5a4   :  { %583 = vmatmul.f32.vlgmr.msrb.gmra.mxu3 %v561_v40 }
 0x5a5   :  { %755 = vmatpush.msrb.mxu3 %v1055_v0 }
 0x5a7   :  { %756 = vmatpush.msrb.mxu3 %v1057_v1 }
 0x5a9   :  { %757 = vmatpush.msrb.mxu3 %v1061_v2 }
 0x5ab   :  { %758 = vmatpush.msrb.mxu3 %v1065_v3 }
 0x5ad   :  { %759 = vmatpush.msrb.mxu3 %v1073_v6 }
 0x5af   :  { %760 = vmatpush.msrb.mxu3 %v1081_v8 }
 0x5b1   :  { %761 = vmatpush.msrb.mxu3 %v1089_v11 }
 0x5b3   :  { %762 = vmatpush.msrb.mxu3 %v1095_v12 }
 0x5b5   :  { %763 = vmatpush.msrb.mxu3 %v1101_v13 }
 0x5b7   :  { %764 = vmatpush.msrb.mxu3 %v1107_v14 }
 0x5b9   :  { %765 = vmatpush.msrb.mxu3 %v1113_v15 }
 0x5bb   :  { %766 = vmatpush.msrb.mxu3 %v1119_v16 }
 0x5bd   :  { %767 = vmatpush.msrb.mxu3 %v1125_v17 }
 0x5bf   :  { %768 = vmatpush.msrb.mxu3 %v1130_v18 }
 0x5c1   :  { %769 = vmatpush.msrb.mxu3 %v1135_v19 }
 0x5c3   :  { %770 = vmatpush.msrb.mxu3 %v1140_v20 }
 0x627   :  { %v584_v43 = vpop.f32.mrf.mxu3 }
 0x628   :  { %v605_v44 = vadd.f32 %v604_v42, %v584_v43 }
 0x62a   :  { %906 = vtanh.f32 %v605_v44 }
 0x630   :  { %v907_v45 = vpop.eup %906 }
 0x631   :  { %v608_v46 = vsel %vm89_vm1, %v907_v45, %v605_v44 }
 0x632   :  { %630 = vmatmul.f32.vlgmr.msrb.gmra.mxu0 %v608_v46 }
 0x633   :  { %802 = vmatpush.msrb.mxu0 %v1055_v0  ;;  %v657_v0 = vld [vmem:[#allocation3 + $0x60] sm:$0xff] }
 0x634   :  { %876 = vmatmul.msk.f32.vlgmr.msra.gmra.mxu2 %vm91_vm0, %v657_v0 }
 0x635   :  { %803 = vmatpush.msrb.mxu0 %v1057_v1  ;;  %v651_v1 = vpop.f32.mrf.mxu1 }
 0x637   :  { %804 = vmatpush.msrb.mxu0 %v1061_v2 }
 0x639   :  { %805 = vmatpush.msrb.mxu0 %v1065_v3 }
 0x63b   :  { %806 = vmatpush.msrb.mxu0 %v1073_v6  ;;  %v704_v6 = vld [vmem:[#allocation3 + $0x68] sm:$0xff] }
 0x63c   :  { %877 = vmatmul.msk.f32.vlgmr.msra.gmra.mxu3 %vm91_vm0, %v704_v6 }
 0x63d   :  { %807 = vmatpush.msrb.mxu0 %v1081_v8 }
 0x63f   :  { %808 = vmatpush.msrb.mxu0 %v1089_v11 }
 0x641   :  { %809 = vmatpush.msrb.mxu0 %v1095_v12 }
 0x643   :  { %810 = vmatpush.msrb.mxu0 %v1101_v13  ;;  %v751_v13 = vld [vmem:[#allocation3 + $0x70] sm:$0xff] }
 0x644   :  { %878 = vmatmul.msk.f32.vlgmr.msra.gmra.mxu0 %vm91_vm0, %v751_v13 }
 0x645   :  { %811 = vmatpush.msrb.mxu0 %v1107_v14 }
 0x647   :  { %812 = vmatpush.msrb.mxu0 %v1113_v15 }
 0x649   :  { %813 = vmatpush.msrb.mxu0 %v1119_v16 }
 0x64b   :  { %814 = vmatpush.msrb.mxu0 %v1125_v17 }
 0x64d   :  { %815 = vmatpush.msrb.mxu0 %v1130_v18 }
 0x64f   :  { %816 = vmatpush.msrb.mxu0 %v1135_v19  ;;  %v798_v19 = vld [vmem:[#allocation3 + $0x78] sm:$0xff] }
 0x651   :  { %817 = vmatpush.msrb.mxu0 %v1140_v20 }
 0x6af   :  { %v631_v2 = vpop.f32.mrf.mxu0 }
 0x6b0   :  { %v652_v3 = vadd.f32 %v651_v1, %v631_v2 }
 0x6b2   :  { %908 = vtanh.f32 %v652_v3 }
 0x6b7   :  { %v698_v7 = vpop.f32.mrf.mxu2 }
 0x6b8   :  { %v909_v4 = vpop.eup %908 }
 0x6b9   :  { %v655_v5 = vsel %vm89_vm1, %v909_v4, %v652_v3 }
 0x6ba   :  { %677 = vmatmul.f32.vlgmr.msra.gmra.mxu1 %v655_v5 }
 0x6bf   :  { %v745_v14 = vpop.f32.mrf.mxu3 }
 0x6c1   :  { %v792_v20 = vpop.f32.mrf.mxu0 }
 0x6c2   :  { %879 = vmatmul.msk.f32.vlgmr.msrb.gmra.mxu1 %vm91_vm0, %v798_v19 }
 0x737   :  { %v678_v8 = vpop.f32.mrf.mxu1 }
 0x738   :  { %v699_v9 = vadd.f32 %v698_v7, %v678_v8 }
 0x73a   :  { %910 = vtanh.f32 %v699_v9 }
 0x73f   :  { %v839_v51 = vpop.f32.mrf.mxu1 }
 0x740   :  { %v911_v11 = vpop.eup %910 }
 0x741   :  { %v702_v12 = vsel %vm89_vm1, %v911_v11, %v699_v9 }
 0x742   :  { %724 = vmatmul.f32.vlgmr.msrb.gmra.mxu2 %v702_v12 }
 0x7c5   :  { %v725_v15 = vpop.f32.mrf.mxu2 }
 0x7c6   :  { %v746_v16 = vadd.f32 %v745_v14, %v725_v15 }
 0x7c8   :  { %912 = vtanh.f32 %v746_v16 }
 0x7ce   :  { %v913_v17 = vpop.eup %912 }
 0x7cf   :  { %v749_v18 = vsel %vm89_vm1, %v913_v17, %v746_v16 }
 0x7d0   :  { %771 = vmatmul.f32.vlgmr.msrb.gmra.mxu3 %v749_v18 }
 0x853   :  { %v772_v47 = vpop.f32.mrf.mxu3 }
 0x854   :  { %v793_v48 = vadd.f32 %v792_v20, %v772_v47 }
 0x856   :  { %914 = vtanh.f32 %v793_v48 }
 0x85c   :  { %v915_v49 = vpop.eup %914 }
 0x85d   :  { %v796_v50 = vsel %vm89_vm1, %v915_v49, %v793_v48 }
 0x85e   :  { %818 = vmatmul.f32.vlgmr.msrb.gmra.mxu0 %v796_v50 }
 0x8db   :  { %v819_v52 = vpop.f32.mrf.mxu0 }
 0x8dc   :  { %v840_v53 = vadd.f32 %v839_v51, %v819_v52 }
 0x8de   :  { %916 = vtanh.f32 %v840_v53 }
 0x8e4   :  { %v917_v54 = vpop.eup %916 }
 0x8e5   :  { %v843_v55 = vsel %vm89_vm1, %v917_v54, %v840_v53 }
 0x8e6   :  { %845 = vst [vmem:[#allocation9] sm:$0xff] %v843_v55 }
 0x8e7   :  { %856 = dma.vmem_to_hbm [thread:$0]  %s852_s2, 128, %s854_s30, [#allocation5]  }
 0x8e8   :  { %1018 = dma.done.wait [#allocation5], 128  }
 0x8e9   :  { %1019 = vsyncadd [#allocation5], 4294967168 }
 0x8ea   :  { %861 = vsyncpa [#allocation4], 1 }
 0x8eb   :  { %862 = vsyncpa [#allocation7], 1 }
 0x8ec   :  { %863 = vsyncpa [#allocation5], 1 }

</bundles_post_ra>
